<compile_context>
chip_gen: v6e
topology: v6e:2x2x1
jax: 0.10.0
libtpu: 0.0.40
codegen_flags: <defaults>
</compile_context>

<pallas_src>
import functools

import jax
import jax.numpy as jnp
from jax.experimental import pallas as pl
from jax.experimental.pallas import tpu as pltpu


def _round_up(x, m):
    return (x + m - 1) // m * m


def _choose_block_b(B, requested):
    """Lane-dense batch tile: multiple of 128; >=2 grid steps for large B (v7x)."""
    bb = _round_up(max(1, min(requested, B)), 128)
    if B > 128 and pl.cdiv(B, bb) < 2:
        bb = _round_up(pl.cdiv(B, 2), 128)
    return bb


def _vae_kernel(inp_ref, wb_ref, out_ref, *,
                state_dim, action_dim, latent_dim, features,
                max_action, offs, kmax):
    S, A, L, F = state_dim, action_dim, latent_dim, features
    SA = S + A
    o_l1, o_e2, o_e3, o_d1z, o_d2, o_d3 = offs
    f32 = jnp.float32

    def w(off, rows, k):           # weight block (rows, k), static slice
        return wb_ref[off:off + rows, 0:k]

    def b(off, rows):              # bias column (rows, 1), static slice
        return wb_ref[off:off + rows, kmax:kmax + 1]

    inp = inp_ref[...]             # (S+A+L, TB); batch on the lane axis
    sa = inp[:SA, :]
    eps = inp[SA:, :]

    # -------- fused first layer: enc-L1 rows [:F], dec-L1(state) rows [F:] ----
    h1 = jnp.dot(w(o_l1, 2 * F, SA), sa, preferred_element_type=f32) + b(o_l1, 2 * F)
    he = jnp.maximum(h1[:F, :], 0.0)          # encoder hidden 1        (F, TB)
    ds = h1[F:, :]                            # decoder state term + bd1 (F, TB)

    # -------- encoder hidden 2 + fused [mu | logstd] head ---------------------
    he = jnp.maximum(jnp.dot(w(o_e2, F, F), he, preferred_element_type=f32)
                     + b(o_e2, F), 0.0)
    head = jnp.dot(w(o_e3, 2 * L, F), he, preferred_element_type=f32) + b(o_e3, 2 * L)

    mu = head[:L, :]
    logstd = jnp.clip(head[L:, :], -4.0, 15.0)
    std = jnp.exp(logstd)
    z = mu + std * eps                        # reparameterized sample  (L, TB)

    # -------- decoder ---------------------------------------------------------
    d = jnp.maximum(ds + jnp.dot(w(o_d1z, F, L), z, preferred_element_type=f32), 0.0)
    d = jnp.maximum(jnp.dot(w(o_d2, F, F), d, preferred_element_type=f32)
                    + b(o_d2, F), 0.0)
    act = jnp.dot(w(o_d3, A, F), d, preferred_element_type=f32) + b(o_d3, A)
    act = max_action * jnp.tanh(act)

    # -------- lane-dense output: direct sublane-slice stores ------------------
    out_ref[:L, :] = mu
    out_ref[L:2 * L, :] = std
    out_ref[2 * L:, :] = act


def vae_forward(state, action, eps, params, *, max_action=1.0, block_b=4096):
    """Fused VAE forward (feature-major). Returns (mu, std, action_out)."""
    B, S = state.shape
    A = action.shape[-1]
    L = eps.shape[-1]                  # latent_dim = 2 * action_dim
    F = params["we2"].shape[0]
    SA = S + A
    out_width = 2 * L + A

    # ---- pack every weight & bias into ONE resident slab ---------------------
    kmax = max(SA, F, L)
    width = kmax + 1                   # last column carries the bias

    # decoder-L1 state block gets zero action columns (exact) and is fused
    # with the encoder first layer so both share one matmul over `sa`.
    wd1s_pad = jnp.pad(params["wd1s"], ((0, 0), (0, A)))
    w_l1 = jnp.concatenate([params["we1"], wd1s_pad], axis=0)          # (2F, SA)
    b_l1 = jnp.concatenate([params["be1"], params["bd1"]], axis=0)     # (2F,)

    parts = [
        (w_l1, b_l1),                          # fused enc-L1 + dec-L1(state)
        (params["we2"], params["be2"]),
        (params["we3"], params["be3"]),        # encoder head -> [mu | logstd]
        (params["wd1z"], None),                # dec-L1 z block (bias in b_l1)
        (params["wd2"], params["bd2"]),
        (params["wd3"], params["bd3"]),
    ]

    offs, blocks, row = [], [], 0
    for wmat, bvec in parts:
        r, k = wmat.shape
        rp = _round_up(r, 8)                   # keep kernel slices sublane-aligned
        blk = jnp.zeros((rp, width), jnp.float32)
        blk = blk.at[:r, :k].set(wmat)
        if bvec is not None:
            blk = blk.at[:r, kmax].set(bvec)
        offs.append(row)
        blocks.append(blk)
        row += rp
    wb = jnp.concatenate(blocks, axis=0)       # resident slab (~25 KiB here)

    # ---- batch tiling: batch mapped to the 128-lane axis ---------------------
    bb = _choose_block_b(B, block_b)
    num_tiles = pl.cdiv(B, bb)
    B_pad = num_tiles * bb

    # One streamed input [state | action | eps]^T; pad batch (lanes) with zeros.
    inp = jnp.concatenate([state, action, eps], axis=-1).T            # (SA+L, B)
    if B_pad != B:
        inp = jnp.pad(inp, ((0, 0), (0, B_pad - B)))

    kernel = functools.partial(
        _vae_kernel, state_dim=S, action_dim=A, latent_dim=L, features=F,
        max_action=float(max_action), offs=tuple(offs), kmax=kmax)

    flops = 2 * B_pad * (SA * 2 * F + F * F + F * 2 * L + L * F + F * F + F * A)
    bytes_accessed = 4 * (int(inp.size) + int(wb.size) + out_width * B_pad)

    out = pl.pallas_call(
        kernel,
        out_shape=jax.ShapeDtypeStruct((out_width, B_pad), jnp.float32),
        grid=(num_tiles,),
        in_specs=[
            pl.BlockSpec((SA + L, bb), lambda i: (0, i)),   # streamed activations
            pl.BlockSpec(wb.shape, lambda i: (0, 0)),       # resident weight slab
        ],
        out_specs=pl.BlockSpec((out_width, bb), lambda i: (0, i)),
        compiler_params=pltpu.CompilerParams(
            dimension_semantics=("parallel",)),
        cost_estimate=pl.CostEstimate(
            flops=int(flops),
            transcendentals=int(B_pad * (L + A)),
            bytes_accessed=int(bytes_accessed)),
    )(inp, wb)

    res = out[:, :B].T                          # (B, 2L+A) = [mu | std | action]
    return res[:, :L], res[:, L:2 * L], res[:, 2 * L:]


def init_params(key, state_dim, action_dim, vae_features, vae_layers=2):
    """Deterministic synthetic parameters; weights stored (out, in), biases (out,)."""
    assert vae_layers == 2  # TODO(synk): generalize to arbitrary hidden-layer count
    latent_dim = 2 * action_dim
    F = vae_features

    def dense(k, fan_in, fan_out):
        return (jax.random.normal(k, (fan_out, fan_in), jnp.float32)
                / jnp.sqrt(jnp.float32(fan_in)))

    def bias(k, n):
        return 0.01 * jax.random.normal(k, (n,), jnp.float32)

    ks = jax.random.split(key, 12)
    p = {}
    # encoder: (S + A) -> F -> F -> 2*latent (head kept fused: [mu | logstd])
    p["we1"] = dense(ks[0], state_dim + action_dim, F); p["be1"] = bias(ks[1], F)
    p["we2"] = dense(ks[2], F, F);                      p["be2"] = bias(ks[3], F)
    p["we3"] = dense(ks[4], F, 2 * latent_dim);         p["be3"] = bias(ks[5], 2 * latent_dim)
    # decoder: (S + latent) -> F -> F -> A ; first layer split into state/z blocks
    wd1 = dense(ks[6], state_dim + latent_dim, F)       # (F, S+L)
    p["wd1s"], p["wd1z"] = wd1[:, :state_dim], wd1[:, state_dim:]
    p["bd1"] = bias(ks[7], F)
    p["wd2"] = dense(ks[8], F, F);                      p["bd2"] = bias(ks[9], F)
    p["wd3"] = dense(ks[10], F, action_dim);            p["bd3"] = bias(ks[11], action_dim)
    return p


def vae_forward_ref(state, action, eps, p, *, max_action=1.0):
    """Pure-JAX reference mirroring the PyTorch module (batch-major)."""
    L = eps.shape[-1]
    sa = jnp.concatenate([state, action], axis=-1)
    h = jnp.maximum(sa @ p["we1"].T + p["be1"], 0.0)
    h = jnp.maximum(h @ p["we2"].T + p["be2"], 0.0)
    head = h @ p["we3"].T + p["be3"]
    mu = head[:, :L]
    logstd = jnp.clip(head[:, L:], -4.0, 15.0)
    std = jnp.exp(logstd)
    z = mu + std * eps
    d = jnp.maximum(state @ p["wd1s"].T + z @ p["wd1z"].T + p["bd1"], 0.0)
    d = jnp.maximum(d @ p["wd2"].T + p["bd2"], 0.0)
    act = max_action * jnp.tanh(d @ p["wd3"].T + p["bd3"])
    return mu, std, act


if __name__ == "__main__":
    # Small shapes consistent with the module.
    batch = 8
    state_dim = 12
    action_dim = 4
    vae_features = 32
    vae_layers = 2
    latent_dim = 2 * action_dim
    max_action = 1.0

    root = jax.random.PRNGKey(0)
    k_state, k_action, k_eps, k_params = jax.random.split(root, 4)

    state = jax.random.normal(k_state, (batch, state_dim), jnp.float32)
    action = jax.random.normal(k_action, (batch, action_dim), jnp.float32)
    # eps drives the reparameterized sample z = mu + std * eps (dist.rsample()).
    eps = jax.random.normal(k_eps, (batch, latent_dim), jnp.float32)

    params = init_params(k_params, state_dim, action_dim, vae_features, vae_layers)

    mu, std, act_out = vae_forward(state, action, eps, params, max_action=max_action)
    jax.block_until_ready((mu, std, act_out))

    mu_r, std_r, act_r = vae_forward_ref(state, action, eps, params, max_action=max_action)
    assert jnp.allclose(mu, mu_r, atol=1e-4, rtol=1e-4), float(jnp.max(jnp.abs(mu - mu_r)))
    assert jnp.allclose(std, std_r, atol=1e-4, rtol=1e-4), float(jnp.max(jnp.abs(std - std_r)))
    assert jnp.allclose(act_out, act_r, atol=1e-4, rtol=1e-4), float(jnp.max(jnp.abs(act_out - act_r)))

    print("KERNEL_OK")
</pallas_src>

<mosaic_0001>
module attributes {stable_mosaic.version = 11 : i64} {
  func.func @_vae_kernel(%arg0: i32, %arg1: memref<24x128xf32, #tpu.memory_space<vmem>>, %arg2: memref<184x33xf32, #tpu.memory_space<vmem>>, %arg3: memref<20x128xf32, #tpu.memory_space<vmem>>) attributes {dimension_semantics = [#tpu.dimension_semantics<parallel>], iteration_bounds = array<i64: 1>, scalar_prefetch = 0 : i64, scratch_operands = 0 : i64, tpu.core_type = #tpu.core_type<tc>, window_params = [{transform_indices = @transform_0, window_bounds = array<i64: 24, 128>}, {pipeline_mode = #tpu.pipeline_mode<synchronous>, transform_indices = @transform_1, window_bounds = array<i64: 184, 33>}, {transform_indices = @transform_2, window_bounds = array<i64: 20, 128>}]} {
    %c0 = arith.constant 0 : index
    %c0_0 = arith.constant 0 : index
    %0 = vector.load %arg1[%c0, %c0_0] : memref<24x128xf32, #tpu.memory_space<vmem>>, vector<24x128xf32>
    %1 = vector.extract_strided_slice %0 {offsets = [0, 0], sizes = [16, 128], strides = [1, 1]} : vector<24x128xf32> to vector<16x128xf32>
    %2 = vector.extract_strided_slice %0 {offsets = [16, 0], sizes = [8, 128], strides = [1, 1]} : vector<24x128xf32> to vector<8x128xf32>
    %c0_1 = arith.constant 0 : index
    %c0_2 = arith.constant 0 : index
    %3 = vector.load %arg2[%c0_1, %c0_2] : memref<184x33xf32, #tpu.memory_space<vmem>>, vector<64x16xf32>
    %cst = arith.constant dense<0.000000e+00> : vector<64x128xf32>
    %4 = tpu.matmul %3, %1, %cst {dimension_numbers = #tpu.dot_dimension_numbers<[1], [0], [0], [1], [0, 0, 1, 1], [], []>} : vector<64x16xf32>, vector<16x128xf32>, vector<64x128xf32> -> vector<64x128xf32>
    %c0_3 = arith.constant 0 : index
    %c32 = arith.constant 32 : index
    %5 = vector.load %arg2[%c0_3, %c32] : memref<184x33xf32, #tpu.memory_space<vmem>>, vector<64x1xf32>
    %6 = vector.broadcast %5 : vector<64x1xf32> to vector<64x128xf32>
    %7 = arith.addf %4, %6 : vector<64x128xf32>
    %8 = vector.extract_strided_slice %7 {offsets = [0, 0], sizes = [32, 128], strides = [1, 1]} : vector<64x128xf32> to vector<32x128xf32>
    %cst_4 = arith.constant 0.000000e+00 : f32
    %9 = vector.broadcast %cst_4 : f32 to vector<32x128xf32>
    %10 = arith.maximumf %8, %9 : vector<32x128xf32>
    %11 = vector.extract_strided_slice %7 {offsets = [32, 0], sizes = [32, 128], strides = [1, 1]} : vector<64x128xf32> to vector<32x128xf32>
    %c64 = arith.constant 64 : index
    %c0_5 = arith.constant 0 : index
    %12 = vector.load %arg2[%c64, %c0_5] : memref<184x33xf32, #tpu.memory_space<vmem>>, vector<32x32xf32>
    %cst_6 = arith.constant dense<0.000000e+00> : vector<32x128xf32>
    %13 = tpu.matmul %12, %10, %cst_6 {dimension_numbers = #tpu.dot_dimension_numbers<[1], [0], [0], [1], [0, 0, 1, 1], [], []>} : vector<32x32xf32>, vector<32x128xf32>, vector<32x128xf32> -> vector<32x128xf32>
    %c64_7 = arith.constant 64 : index
    %c32_8 = arith.constant 32 : index
    %14 = vector.load %arg2[%c64_7, %c32_8] : memref<184x33xf32, #tpu.memory_space<vmem>>, vector<32x1xf32>
    %15 = vector.broadcast %14 : vector<32x1xf32> to vector<32x128xf32>
    %16 = arith.addf %13, %15 : vector<32x128xf32>
    %cst_9 = arith.constant 0.000000e+00 : f32
    %17 = vector.broadcast %cst_9 : f32 to vector<32x128xf32>
    %18 = arith.maximumf %16, %17 : vector<32x128xf32>
    %c96 = arith.constant 96 : index
    %c0_10 = arith.constant 0 : index
    %19 = vector.load %arg2[%c96, %c0_10] : memref<184x33xf32, #tpu.memory_space<vmem>>, vector<16x32xf32>
    %cst_11 = arith.constant dense<0.000000e+00> : vector<16x128xf32>
    %20 = tpu.matmul %19, %18, %cst_11 {dimension_numbers = #tpu.dot_dimension_numbers<[1], [0], [0], [1], [0, 0, 1, 1], [], []>} : vector<16x32xf32>, vector<32x128xf32>, vector<16x128xf32> -> vector<16x128xf32>
    %c96_12 = arith.constant 96 : index
    %c32_13 = arith.constant 32 : index
    %21 = vector.load %arg2[%c96_12, %c32_13] : memref<184x33xf32, #tpu.memory_space<vmem>>, vector<16x1xf32>
    %22 = vector.broadcast %21 : vector<16x1xf32> to vector<16x128xf32>
    %23 = arith.addf %20, %22 : vector<16x128xf32>
    %24 = vector.extract_strided_slice %23 {offsets = [0, 0], sizes = [8, 128], strides = [1, 1]} : vector<16x128xf32> to vector<8x128xf32>
    %25 = vector.extract_strided_slice %23 {offsets = [8, 0], sizes = [8, 128], strides = [1, 1]} : vector<16x128xf32> to vector<8x128xf32>
    %cst_14 = arith.constant -4.000000e+00 : f32
    %cst_15 = arith.constant 1.500000e+01 : f32
    %26 = vector.broadcast %cst_14 : f32 to vector<8x128xf32>
    %27 = arith.maximumf %26, %25 : vector<8x128xf32>
    %28 = vector.broadcast %cst_15 : f32 to vector<8x128xf32>
    %29 = arith.minimumf %28, %27 : vector<8x128xf32>
    %30 = math.exp %29 : vector<8x128xf32>
    %31 = arith.mulf %30, %2 : vector<8x128xf32>
    %32 = arith.addf %24, %31 : vector<8x128xf32>
    %c112 = arith.constant 112 : index
    %c0_16 = arith.constant 0 : index
    %33 = vector.load %arg2[%c112, %c0_16] : memref<184x33xf32, #tpu.memory_space<vmem>>, vector<32x8xf32>
    %cst_17 = arith.constant dense<0.000000e+00> : vector<32x128xf32>
    %34 = tpu.matmul %33, %32, %cst_17 {dimension_numbers = #tpu.dot_dimension_numbers<[1], [0], [0], [1], [0, 0, 1, 1], [], []>} : vector<32x8xf32>, vector<8x128xf32>, vector<32x128xf32> -> vector<32x128xf32>
    %35 = arith.addf %11, %34 : vector<32x128xf32>
    %cst_18 = arith.constant 0.000000e+00 : f32
    %36 = vector.broadcast %cst_18 : f32 to vector<32x128xf32>
    %37 = arith.maximumf %35, %36 : vector<32x128xf32>
    %c144 = arith.constant 144 : index
    %c0_19 = arith.constant 0 : index
    %38 = vector.load %arg2[%c144, %c0_19] : memref<184x33xf32, #tpu.memory_space<vmem>>, vector<32x32xf32>
    %cst_20 = arith.constant dense<0.000000e+00> : vector<32x128xf32>
    %39 = tpu.matmul %38, %37, %cst_20 {dimension_numbers = #tpu.dot_dimension_numbers<[1], [0], [0], [1], [0, 0, 1, 1], [], []>} : vector<32x32xf32>, vector<32x128xf32>, vector<32x128xf32> -> vector<32x128xf32>
    %c144_21 = arith.constant 144 : index
    %c32_22 = arith.constant 32 : index
    %40 = vector.load %arg2[%c144_21, %c32_22] : memref<184x33xf32, #tpu.memory_space<vmem>>, vector<32x1xf32>
    %41 = vector.broadcast %40 : vector<32x1xf32> to vector<32x128xf32>
    %42 = arith.addf %39, %41 : vector<32x128xf32>
    %cst_23 = arith.constant 0.000000e+00 : f32
    %43 = vector.broadcast %cst_23 : f32 to vector<32x128xf32>
    %44 = arith.maximumf %42, %43 : vector<32x128xf32>
    %c176 = arith.constant 176 : index
    %c0_24 = arith.constant 0 : index
    %45 = vector.load %arg2[%c176, %c0_24] : memref<184x33xf32, #tpu.memory_space<vmem>>, vector<4x32xf32>
    %cst_25 = arith.constant dense<0.000000e+00> : vector<4x128xf32>
    %46 = tpu.matmul %45, %44, %cst_25 {dimension_numbers = #tpu.dot_dimension_numbers<[1], [0], [0], [1], [0, 0, 1, 1], [], []>} : vector<4x32xf32>, vector<32x128xf32>, vector<4x128xf32> -> vector<4x128xf32>
    %c176_26 = arith.constant 176 : index
    %c32_27 = arith.constant 32 : index
    %47 = vector.load %arg2[%c176_26, %c32_27] : memref<184x33xf32, #tpu.memory_space<vmem>>, vector<4x1xf32>
    %48 = vector.broadcast %47 : vector<4x1xf32> to vector<4x128xf32>
    %49 = arith.addf %46, %48 : vector<4x128xf32>
    %50 = math.tanh %49 : vector<4x128xf32>
    %cst_28 = arith.constant 1.000000e+00 : f32
    %51 = vector.broadcast %cst_28 : f32 to vector<4x128xf32>
    %52 = arith.mulf %51, %50 : vector<4x128xf32>
    %c0_29 = arith.constant 0 : index
    %c0_30 = arith.constant 0 : index
    %53 = vector.load %arg3[%c0_29, %c0_30] : memref<20x128xf32, #tpu.memory_space<vmem>>, vector<8x128xf32>
    tpu.vector_store %arg3[%c0_29, %c0_30], %24 {strides = array<i32>} : memref<20x128xf32, #tpu.memory_space<vmem>>, vector<8x128xf32>,
    %c8 = arith.constant 8 : index
    %c0_31 = arith.constant 0 : index
    %54 = vector.load %arg3[%c8, %c0_31] : memref<20x128xf32, #tpu.memory_space<vmem>>, vector<8x128xf32>
    tpu.vector_store %arg3[%c8, %c0_31], %30 {strides = array<i32>} : memref<20x128xf32, #tpu.memory_space<vmem>>, vector<8x128xf32>,
    %c16 = arith.constant 16 : index
    %c0_32 = arith.constant 0 : index
    %55 = vector.load %arg3[%c16, %c0_32] : memref<20x128xf32, #tpu.memory_space<vmem>>, vector<4x128xf32>
    tpu.vector_store %arg3[%c16, %c0_32], %52 {strides = array<i32>} : memref<20x128xf32, #tpu.memory_space<vmem>>, vector<4x128xf32>,
    return
  }
  func.func @transform_0(%arg0: i32) -> (i32, i32) {
    %c0_i32 = arith.constant 0 : i32
    %c0_i32_0 = arith.constant 0 : i32
    return %c0_i32, %arg0 : i32, i32
  }
  func.func @transform_1(%arg0: i32) -> (i32, i32) {
    %c0_i32 = arith.constant 0 : i32
    %c0_i32_0 = arith.constant 0 : i32
    %c0_i32_1 = arith.constant 0 : i32
    return %c0_i32, %c0_i32_0 : i32, i32
  }
  func.func @transform_2(%arg0: i32) -> (i32, i32) {
    %c0_i32 = arith.constant 0 : i32
    %c0_i32_0 = arith.constant 0 : i32
    return %c0_i32, %arg0 : i32, i32
  }
}

</mosaic_0001>

<bundles_post_ra>
// kernel: tpu_custom_call.1
= control target key start
LH: loop header
LB: loop body
LE: loop exit
PB: predicated region body
PF: predicated region fallthrough
CT: control target
= control target key end

     0   :  { %vm63_vm0 = vcmask 130048   ;;  %v910_v5 = vmov 32   ;;  %s1059_s0 = inlined_call_operand.vmem [shape: f32[24,128], index: 0, kind: input, shape index: {}]   ;;  %s1060_s1 = inlined_call_operand.vmem [shape: f32[184,33], index: 1, kind: input, shape index: {}]   ;;  %s1061_s2 = inlined_call_operand.hbm [shape: f32[20,128], index: 2, kind: output, shape index: {}]  }
   0x1   :  { %v13_v0 = vld [vmem:[%s1059_s0 + $0x8] sm:$0xff]  ;;  %v12_v1 = vld [vmem:[%s1059_s0] sm:$0xff]  ;;  %v18_v4 = vld [vmem:[%s1060_s1 + $0x18] sm:$0xff]  ;;  %882 = vset.pattern.permute.xlu0 %v910_v5  ;;  %883 = vset.pattern.permute.xlu1 %v910_v5 }
   0x2   :  { %v15_v2 = vld [vmem:[%s1060_s1] sm:$0xff]  ;;  %802 = vmatprep.subr.mxu0 %v13_v0  ;;  %v16_v3 = vld [vmem:[%s1060_s1 + $0x8] sm:$0xff]  ;;  %v17_v6 = vld [vmem:[%s1060_s1 + $0x10] sm:$0xff]  ;;  %40 = vperm.xlu0 %882, %v18_v4  }
   0x3   :  { %806 = vmatprep.mubr.msk.f32.mxu0 %vm63_vm0, %v15_v2  ;;  %803 = vmatpush3.msra.mxu0 %v13_v0  ;;  %v19_v7 = vld [vmem:[%s1060_s1 + $0x20] sm:$0xff] }
   0x4   :  { %804 = vmatprep.subr.mxu0 %v12_v1  ;;  %30 = vperm.xlu1 %883, %v16_v3  }
   0x5   :  { %805 = vmatpush3.msra.mxu0 %v12_v1 }
   0x6   :  { %807 = vmatmul.mubr.msk.f32.vlgmr.msra.gmra.mxu0 %vm63_vm0, %v16_v3  ;;  %35 = vperm.xlu0 %882, %v17_v6  }
   0x7   :  { %809 = vmatprep.mubr.msk.f32.mxu0 %vm63_vm0, %v17_v6 }
   0x8   :  { %7 = vsyncpa [#allocation3], 0  ;;  %v958_v8 = vld [vmem:[%s1060_s1 + $0x58] sm:$0xff]  ;;  %25 = vperm.xlu1 %883, %v15_v2   ;;  %v20_v9 = vld [vmem:[%s1060_s1 + $0x28] sm:$0xff]  ;;  %vm213_vm1 = vcmask 261120   ;;  %vm412_vm2 = vcmask 64512  }
   0x9   :  { %v191_v10 = vld [vmem:[%s1060_s1 + $0x50] sm:$0xff]  ;;  %v190_v12 = vld [vmem:[%s1060_s1 + $0x48] sm:$0xff]  ;;  %v22_v13 = vld [vmem:[%s1060_s1 + $0x38] sm:$0xff]  ;;  %vm912_vm3 = vmmov 0  }
   0xa   :  { %810 = vmatmul.mubr.msk.f32.gmra.mxu0 %vm63_vm0, %v18_v4  ;;  %v21_v11 = vld [vmem:[%s1060_s1 + $0x30] sm:$0xff]  ;;  %210 = vperm.xlu0 %882, %v958_v8   ;;  %v189_v14 = vld [vmem:[%s1060_s1 + $0x40] sm:$0xff]  ;;  %v986_v15 = vld [vmem:[%s1060_s1 + $0x68] sm:$0xff] }
   0xb   :  { %812 = vmatprep.mubr.msk.f32.mxu0 %vm63_vm0, %v19_v7  ;;  %v311_v16 = vld [vmem:[%s1060_s1 + $0x60] sm:$0xff]  ;;  %v996_v17 = vld [vmem:[%s1060_s1 + $0xa8] sm:$0xff]  ;;  %v1007_v19 = vld [vmem:[%s1060_s1 + $0x98] sm:$0xff]  ;;  %826 = vmatprep.mubr.msk.f32.mxu1 %vm213_vm1, %v189_v14 }
   0xc   :  { %205 = vperm.xlu1 %883, %v191_v10   ;;  %v1001_v18 = vld [vmem:[%s1060_s1 + $0xa0] sm:$0xff]  ;;  %v518_v20 = vld [vmem:[%s1060_s1 + $0x90] sm:$0xff]  ;;  %v409_v4 = vld [vmem:[%s1060_s1 + $0x78] sm:$0xff] }
   0xd   :  { %v1017_v21 = vld [vmem:[%s1060_s1 + $0xb0] sm:$0xf]  ;;  %v410_v5 = vld [vmem:[%s1060_s1 + $0x80] sm:$0xff]  ;;  %v411_v6 = vld [vmem:[%s1060_s1 + $0x88] sm:$0xff] }
   0xe   :  { %813 = vmatmul.mubr.msk.f32.gmra.mxu0 %vm63_vm0, %v20_v9  ;;  %200 = vperm.xlu0 %882, %v190_v12   ;;  %v408_v54 = vld [vmem:[%s1060_s1 + $0x70] sm:$0xff]  ;;  %s913_s1 = smov [#allocation2]  }
   0xf   :  { %815 = vmatprep.mubr.msk.f32.mxu0 %vm63_vm0, %v21_v11  ;;  %v14_v0 = vld [vmem:[%s1059_s0 + $0x10] sm:$0xff]  ;;  %s726_s4 = sshll.u32 %s913_s1, 4  ;;  %s727_s4 = int_to_ptr.vmem [resolvable:$true] %s726_s4 }
  0x10   :  { %195 = vperm.xlu1 %883, %v189_v14   ;;  %s888_s5 = scalar_lea.vmem %s727_s4, 384  ;;  %p893_p1 = scmp.lt.s32.totalorder %s727_s4, %s727_s4 }
  0x11   :  { %p889_p0 = scmp.ne.s32.totalorder %s727_s4, %s888_s5  ;;  %p894_p2 = scmp.lt.s32.totalorder %s888_s5, %s888_s5 }
  0x12   :  { %816 = vmatmul.mubr.msk.f32.gmra.mxu0 %vm63_vm0, %v22_v13  ;;  %320 = vperm.xlu0 %882, %v986_v15  }
  0x13   :  { %845 = vmatprep.mubr.msk.f32.mxu0 %vm412_vm2, %v408_v54  ;;  %p895_p3 = por %p894_p2, %p893_p1 }
  0x14   :  { %315 = vperm.xlu1 %883, %v311_v16  }
  0x15   :  { %p896_p4 = pnand %p895_p3, %p889_p0 }
  0x16   :  { %60 = vperm.xlu0 %882, %v22_v13  }
  0x18   :  { %55 = vperm.xlu1 %883, %v21_v11  }
  0x1a   :  { %50 = vperm.xlu0 %882, %v20_v9  }
  0x1c   :  { %45 = vperm.xlu1 %883, %v19_v7  }
  0x1e   :  { %539 = vperm.xlu0 %882, %v996_v17  }
  0x20   :  { %534 = vperm.xlu1 %883, %v1001_v18  }
  0x22   :  { %529 = vperm.xlu0 %882, %v1007_v19  }
  0x24   :  { %524 = vperm.xlu1 %883, %v518_v20  }
  0x26   :  { %642 = vperm.xlu0 %882, %v1017_v21  }
  0x7d   :  { %v41_v22 = vpop.permute.xlu0 %40 }
  0x7f   :  { %v31_v24 = vpop.permute.xlu1 %30 }
  0x81   :  { %v36_v28 = vpop.permute.xlu0 %35 }
  0x83   :  { %v26_v33 = vpop.permute.xlu1 %25 }
  0x85   :  { %v211_v38 = vpop.permute.xlu0 %210 }
  0x87   :  { %v206_v40 = vpop.permute.xlu1 %205 }
  0x89   :  { %v201_v44 = vpop.permute.xlu0 %200 }
  0x8b   :  { %v196_v49 = vpop.permute.xlu1 %195 }
  0x8d   :  { %v321_v55 = vpop.permute.xlu0 %320 }
  0x8f   :  { %v316_v58 = vpop.permute.xlu1 %315 }
  0xc6   :  { %v808_v23 = vpop.f32.mrf.mxu0 }
  0xc7   :  { %v152_v30 = vadd.f32 %v808_v23, %v31_v24 }
  0xc8   :  { %v146_v25 = vpop.f32.mrf.mxu0 }
  0xc9   :  { %v147_v34 = vadd.f32 %v146_v25, %v26_v33  ;;  %v186_v36 = vmax.f32 %v152_v30, 0.0 }
  0xca   :  { %v811_v26 = vpop.f32.mrf.mxu0 }
  0xcb   :  { %v162_v27 = vadd.f32 %v811_v26, %v41_v22  ;;  %v185_v37 = vmax.f32 %v147_v34, 0.0 }
  0xcc   :  { %v156_v29 = vpop.f32.mrf.mxu0 }
  0xcd   :  { %v188_v31 = vmax.f32 %v162_v27, 0.0  ;;  %v157_v32 = vadd.f32 %v156_v29, %v36_v28 }
  0xce   :  { %v814_v7 = vpop.f32.mrf.mxu0 }
  0xcf   :  { %v187_v35 = vmax.f32 %v157_v32, 0.0  ;;  %818 = vmatprep.subr.mxu1 %v188_v31 }
  0xd0   :  { %819 = vmatpush3.msra.mxu1 %v188_v31 }
  0xd1   :  { %820 = vmatprep.subr.mxu1 %v187_v35 }
  0xd2   :  { %821 = vmatpush3.msra.mxu1 %v187_v35  ;;  %v911_v35 = vmov 0.0  }
  0xd3   :  { %822 = vmatprep.subr.mxu1 %v186_v36 }
  0xd4   :  { %823 = vmatpush3.msra.mxu1 %v186_v36 }
  0xd5   :  { %824 = vmatprep.subr.mxu1 %v185_v37 }
  0xd6   :  { %825 = vmatpush3.msra.mxu1 %v185_v37 }
  0xd7   :  { %827 = vmatmul.mubr.msk.f32.vlgmr.msra.gmra.mxu1 %vm213_vm1, %v190_v12  ;;  %v56_v12 = vpop.permute.xlu1 %55 }
  0xd8   :  { %829 = vmatprep.mubr.msk.f32.mxu1 %vm213_vm1, %v191_v10  ;;  %v61_v10 = vpop.permute.xlu0 %60 }
  0xdb   :  { %830 = vmatmul.mubr.msk.f32.gmra.mxu1 %vm213_vm1, %v958_v8  ;;  %v166_v8 = vpop.f32.mrf.mxu0  ;;  %v46_v25 = vpop.permute.xlu1 %45 }
  0xdc   :  { %840 = vmatprep.mubr.msk.f32.mxu1 %vm213_vm1, %v311_v16  ;;  %v51_v16 = vpop.permute.xlu0 %50  ;;  %v167_v27 = vadd.f32 %v166_v8, %v46_v25 }
  0xdd   :  { %v817_v9 = vpop.f32.mrf.mxu0  ;;  %v172_v22 = vadd.f32 %v814_v7, %v51_v16 }
  0xdf   :  { %v176_v11 = vpop.f32.mrf.mxu0 }
  0xe0   :  { %v177_v23 = vadd.f32 %v176_v11, %v56_v12  ;;  %v540_v36 = vpop.permute.xlu0 %539 }
 0x197   :  { %v828_v39 = vpop.f32.mrf.mxu1 }
 0x198   :  { %v294_v46 = vadd.f32 %v828_v39, %v201_v44 }
 0x199   :  { %v288_v41 = vpop.f32.mrf.mxu1 }
 0x19a   :  { %v289_v50 = vadd.f32 %v288_v41, %v196_v49  ;;  %v308_v52 = vmax.f32 %v294_v46, 0.0 }
 0x19b   :  { %v831_v42 = vpop.f32.mrf.mxu1 }
 0x19c   :  { %v304_v43 = vadd.f32 %v831_v42, %v211_v38  ;;  %v307_v53 = vmax.f32 %v289_v50, 0.0  ;;  %v535_v38 = vpop.permute.xlu1 %534  ;;  %v530_v42 = vpop.permute.xlu0 %529 }
 0x19d   :  { %v298_v45 = vpop.f32.mrf.mxu1 }
 0x19e   :  { %v310_v47 = vmax.f32 %v304_v43, 0.0  ;;  %v299_v48 = vadd.f32 %v298_v45, %v206_v40 }
 0x1a0   :  { %v309_v51 = vmax.f32 %v299_v48, 0.0  ;;  %832 = vmatprep.subr.mxu1 %v310_v47  ;;  %v525_v46 = vpop.permute.xlu1 %524  ;;  %v643_v49 = vpop.permute.xlu0 %642 }
 0x1a1   :  { %833 = vmatpush3.msra.mxu1 %v310_v47 }
 0x1a2   :  { %834 = vmatprep.subr.mxu1 %v309_v51 }
 0x1a3   :  { %835 = vmatpush3.msra.mxu1 %v309_v51 }
 0x1a4   :  { %836 = vmatprep.subr.mxu1 %v308_v52 }
 0x1a5   :  { %837 = vmatpush3.msra.mxu1 %v308_v52 }
 0x1a6   :  { %838 = vmatprep.subr.mxu1 %v307_v53 }
 0x1a7   :  { %839 = vmatpush3.msra.mxu1 %v307_v53 }
 0x1a8   :  { %841 = vmatmul.mubr.msk.f32.vlgmr.msra.gmra.mxu1 %vm213_vm1, %v986_v15  ;;  %v182_v15 = vadd.f32 %v817_v9, %v61_v10 }
 0x1a9   :  { %859 = vmatprep.mubr.msk.f32.mxu1 %vm213_vm1, %v518_v20 }
 0x268   :  { %v842_v56 = vpop.f32.mrf.mxu1 }
 0x269   :  { %v399_v57 = vadd.f32 %v842_v56, %v321_v55 }
 0x26a   :  { %v393_v59 = vpop.f32.mrf.mxu1 }
 0x26b   :  { %v402_v60 = vmax.f32 %v399_v57, -4.0  ;;  %v394_v61 = vadd.f32 %v393_v59, %v316_v58 }
 0x26d   :  { %v403_v62 = vmin.f32 %v402_v60, 15.0  ;;  %718 = vst [vmem:[#allocation2] sm:$0xff] %v394_v61 }
 0x26f   :  { %v404_v63 = vmul.f32 1.442695, %v403_v62 }
 0x271   :  { %884 = vpow2.f32 %v404_v63 }
 0x27e   :  { %v885_v1 = vpop.eup %884 }
 0x27f   :  { %719 = vst [vmem:[#allocation2 + $0x8] sm:$0xff] %v885_v1  ;;  %v406_v2 = vmul.f32 %v885_v1, %v14_v0 }
 0x281   :  { %v407_v3 = vadd.f32 %v406_v2, %v394_v61 }
 0x283   :  { %843 = vmatprep.subr.mxu0 %v407_v3 }
 0x284   :  { %844 = vmatpush3.msra.mxu0 %v407_v3 }
 0x285   :  { %846 = vmatmul.mubr.msk.f32.vlgmr.msra.gmra.mxu0 %vm412_vm2, %v409_v4  ;;  %865 = vmatprep.subr.mxu0 %v911_v35 }
 0x286   :  { %848 = vmatprep.mubr.msk.f32.mxu0 %vm412_vm2, %v410_v5 }
 0x289   :  { %849 = vmatmul.mubr.msk.f32.gmra.mxu0 %vm412_vm2, %v411_v6 }
 0x28a   :  { %873 = vmatprep.mubr.msk.f32.mxu0 %vm912_vm3, %v911_v35 }
 0x345   :  { %v847_v13 = vpop.f32.mrf.mxu0 }
 0x346   :  { %v511_v28 = vadd.f32 %v847_v13, %v172_v22 }
 0x347   :  { %v491_v14 = vpop.f32.mrf.mxu0 }
 0x348   :  { %v510_v31 = vadd.f32 %v491_v14, %v167_v27  ;;  %v515_v33 = vmax.f32 %v511_v28, 0.0 }
 0x349   :  { %v850_v20 = vpop.f32.mrf.mxu0 }
 0x34a   :  { %v513_v24 = vadd.f32 %v850_v20, %v182_v15  ;;  %v514_v34 = vmax.f32 %v510_v31, 0.0 }
 0x34b   :  { %v501_v26 = vpop.f32.mrf.mxu0 }
 0x34c   :  { %v517_v29 = vmax.f32 %v513_v24, 0.0  ;;  %v512_v30 = vadd.f32 %v501_v26, %v177_v23 }
 0x34e   :  { %v516_v32 = vmax.f32 %v512_v30, 0.0  ;;  %851 = vmatprep.subr.mxu1 %v517_v29 }
 0x34f   :  { %852 = vmatpush3.msra.mxu1 %v517_v29 }
 0x350   :  { %853 = vmatprep.subr.mxu1 %v516_v32 }
 0x351   :  { %854 = vmatpush3.msra.mxu1 %v516_v32 }
 0x352   :  { %855 = vmatprep.subr.mxu1 %v515_v33 }
 0x353   :  { %856 = vmatpush3.msra.mxu1 %v515_v33 }
 0x354   :  { %857 = vmatprep.subr.mxu1 %v514_v34 }
 0x355   :  { %858 = vmatpush3.msra.mxu1 %v514_v34 }
 0x356   :  { %860 = vmatmul.mubr.msk.f32.vlgmr.msra.gmra.mxu1 %vm213_vm1, %v1007_v19 }
 0x357   :  { %862 = vmatprep.mubr.msk.f32.mxu1 %vm213_vm1, %v1001_v18 }
 0x35a   :  { %863 = vmatmul.mubr.msk.f32.gmra.mxu1 %vm213_vm1, %v996_v17 }
 0x416   :  { %v861_v37 = vpop.f32.mrf.mxu1 }
 0x417   :  { %v622_v44 = vadd.f32 %v861_v37, %v530_v42 }
 0x418   :  { %v616_v39 = vpop.f32.mrf.mxu1 }
 0x419   :  { %v617_v18 = vadd.f32 %v616_v39, %v525_v46  ;;  %v636_v17 = vmax.f32 %v622_v44, 0.0 }
 0x41a   :  { %v864_v40 = vpop.f32.mrf.mxu1 }
 0x41b   :  { %v632_v41 = vadd.f32 %v864_v40, %v540_v36  ;;  %v635_v48 = vmax.f32 %v617_v18, 0.0 }
 0x41c   :  { %v626_v43 = vpop.f32.mrf.mxu1 }
 0x41d   :  { %v638_v19 = vmax.f32 %v632_v41, 0.0  ;;  %v627_v45 = vadd.f32 %v626_v43, %v535_v38 }
 0x41f   :  { %v637_v47 = vmax.f32 %v627_v45, 0.0  ;;  %866 = vmatpush3.msra.mxu0 %v638_v19 }
 0x420   :  { %867 = vmatprep.subr.mxu0 %v911_v35 }
 0x421   :  { %868 = vmatpush3.msra.mxu0 %v637_v47 }
 0x422   :  { %869 = vmatprep.subr.mxu0 %v911_v35 }
 0x423   :  { %870 = vmatpush3.msra.mxu0 %v636_v17 }
 0x424   :  { %871 = vmatprep.subr.mxu0 %v911_v35 }
 0x425   :  { %872 = vmatpush3.msra.mxu0 %v635_v48 }
 0x426   :  { %874 = vmatmul.mubr.msk.f32.vlgmr.msra.gmra.mxu0 %vm213_vm1, %v1017_v21 }
 0x4e6   :  { %v713_v50 = vpop.f32.mrf.mxu0 }
 0x4e7   :  { %v714_v51 = vadd.f32 %v713_v50, %v643_v49 }
 0x4e8   :  { %v875_v52 = vpop.f32.mrf.mxu0 }
 0x4e9   :  { %886 = vtanh.f32 %v714_v51 }
 0x4f6   :  { %v887_v53 = vpop.eup %886 }
 0x4f7   :  { %720 = vst [vmem:[#allocation2 + $0x10] sm:$0xf] %v887_v53 }
 0x4f8   :  { %899 = shalt.err (!%p896_p4)
}
 0x4f9   :  { %s914_s6 = smov 128   ;;  %s915_s7 = smov 8  }
 0x4fa   :  { %732 = dma.vmem_to_hbm [thread:$0]  %s727_s4, 384, %s1061_s2, [#allocation3], %s914_s6, %s914_s6, %s915_s7  }
 0x4fb   :  { %908 = dma.done.wait [#allocation3], 384  }
 0x4fc   :  { %909 = vsyncadd [#allocation3], 4294966912 }
 0x4fd   :  { %736 = vsyncpa [#allocation3], 1 }

</bundles_post_ra>
